<compile_context>
chip_gen: v6e
topology: v6e:2x2x1
jax: 0.10.0
libtpu: 0.0.40
codegen_flags: <defaults>
</compile_context>

<pallas_src>
import functools

import jax
import jax.numpy as jnp
from jax import lax
from jax.experimental import pallas as pl
from jax.experimental.pallas import tpu as pltpu


def _round_up(x, m):
    return ((x + m - 1) // m) * m


def _pick_graphs_per_block(batch, n):
    # Pack several tiny graphs into one grid step (amortizes pipeline overhead,
    # bigger DMAs); cap the per-block (N,N) footprint so intermediates stay
    # comfortably inside VMEM as N grows.
    for g in (8, 4, 2, 1):
        if batch % g == 0 and g * n * n <= (1 << 17):
            return g
    return 1


def _vmem_limit_bytes():
    # Per-generation scoped-VMEM limit: ~3/4 of physical (v5e/v6e ≈ 96 MiB,
    # v7x ≈ 48 MiB), never below 32 MiB.
    try:
        cap = int(pltpu.get_tpu_info().vmem_capacity_bytes)
    except Exception:
        cap = 64 * 1024 * 1024
    return max(32 * 1024 * 1024, min(cap * 3 // 4, 100 * 1024 * 1024))


# ---------------------------------------------------------------------------
# Fused kernel: one block = GB graphs, full per-graph pipeline in VMEM.
# ---------------------------------------------------------------------------

def _cocn_fused_kernel(m_ref, mrow_ref, x_ref, a_ref,
                       wagg_ref, wself_ref, w01_ref, w2_ref,
                       o_ref,
                       *, graphs_per_block, n_classes, self_loop, app_adj,
                       apply_log_softmax, beta=10.0):
    f32 = jnp.float32
    bf16 = jnp.bfloat16

    # Shared weights: loaded once per block, reused for every graph.
    wagg = wagg_ref[...]                       # (1, F)   ranking weights (VPU path)
    wself = wself_ref[...]                     # (1, F)
    w01 = w01_ref[...].astype(bf16)            # (2W, H)  stacked [w0; w1]
    w2 = w2_ref[...].astype(bf16)              # (H, C_pad)

    # Static unrolled loop over the graphs packed into this block.
    for g in range(graphs_per_block):
        m = m_ref[g]                           # (N, 1) node mask (column layout)
        m_row = mrow_ref[g]                    # (1, N) node mask (row layout)
        x = x_ref[g]                           # (N, F) masked features, f32
        a_bf = a_ref[g]                        # (N, N) masked adjacency, bf16
        n = a_bf.shape[0]

        # ---------------- normalized-adjacency aggregate: agg = Ahat @ X ----
        # Ahat = D^{-1/2}(A + s*I_valid)D^{-1/2} is never materialized:
        #   deg = rowsum(A) + s*m ;  agg = dinv * (A @ (dinv*x) + s*(dinv*x))
        deg = jnp.sum(a_bf.astype(f32), axis=-1, keepdims=True) + f32(self_loop) * m
        dinv = jnp.where(deg > 0, lax.rsqrt(deg), 0.0)      # (N, 1)
        y = dinv * x                                        # (N, F)
        agg = dinv * (jnp.dot(a_bf, y.astype(bf16), preferred_element_type=f32)
                      + f32(self_loop) * y)                 # (N, F) == Ahat @ X

        # ---------------- ranking scores on the VPU (no width-1 MXU dots) ---
        score = jnp.tanh(jnp.sum(agg * wagg, axis=-1, keepdims=True)
                         + jnp.sum(x * wself, axis=-1, keepdims=True))   # (N, 1)
        s_row = jnp.transpose(score)                                     # (1, N)

        # ---------------- differentiable permutation (relative ranks) -------
        #   r_i = sum_{j valid} sigmoid(beta (s_i - s_j))
        #   P[k, i] = softmax_i ( -(r_i - k)^2 )   over valid nodes i
        diff = s_row - score                            # (N, N): [j, i] = s_i - s_j
        sig = (1.0 / (1.0 + jnp.exp(-beta * diff))) * m  # exact sigmoid (rank sums)
        r_row = jnp.sum(sig, axis=0, keepdims=True)     # (1, N) continuous rank r_i
        # (rank-fill for padded nodes is redundant: their columns are killed by
        #  the additive -1e9 mask below, so it never affects the softmax.)
        k_pos = lax.broadcasted_iota(jnp.int32, (n, n), 0).astype(f32)
        neg_row = (m_row - 1.0) * 1e9                   # 0 valid / -1e9 padded
        logits = neg_row - jnp.square(r_row - k_pos)    # (N_pos, N_node)
        mx = jnp.max(logits, axis=-1, keepdims=True)
        e = jnp.exp(logits - mx)
        perm = e * pl.reciprocal(jnp.sum(e, axis=-1, keepdims=True), approx=True)

        # ---------------- CoCN core: msg = P A Pᵀ (P Xcat), right-associated -
        # TODO(synk): on v6e/v7x the (N,N) elementwise perm pipeline above could
        # run in bf16 (and the A/P matmul legs in fp8 on v7x) once tolerance-
        # validated; kept f32/bf16 here for portability to v5e.
        pb = perm.astype(bf16)
        pbT = jnp.transpose(perm).astype(bf16)
        if app_adj:
            xcat = jnp.concatenate([x, agg], axis=-1).astype(bf16)   # (N, 2F)
        else:
            # app_adj=False specialization: appended AhatX features dropped
            # entirely (no zero-weight matmuls).
            xcat = x.astype(bf16)                                    # (N, F)
        xp = jnp.dot(pb, xcat, preferred_element_type=f32)               # P Xcat
        t1 = jnp.dot(pbT, xp.astype(bf16), preferred_element_type=f32)   # Pᵀ(...)
        t2 = jnp.dot(a_bf, t1.astype(bf16), preferred_element_type=f32)  # A (...)
        msg = jnp.dot(pb, t2.astype(bf16), preferred_element_type=f32)   # P (...)
        hcat = jnp.concatenate([xp, msg], axis=-1).astype(bf16)          # (N, 2W)
        pre = jnp.dot(hcat, w01, preferred_element_type=f32)             # (N, H)
        h = jnp.maximum(pre, 0.0)
        out = jnp.dot(h.astype(bf16), w2, preferred_element_type=f32)    # (N, C_pad)

        # ---------------- masked log-softmax over the real classes ----------
        if apply_log_softmax:
            cls = lax.broadcasted_iota(jnp.int32, out.shape, 1)
            valid_cls = cls < n_classes
            lm = jnp.where(valid_cls, out, f32(-1e30))
            cmx = jnp.max(lm, axis=-1, keepdims=True)
            ssum = jnp.sum(jnp.where(valid_cls, jnp.exp(lm - cmx), 0.0),
                           axis=-1, keepdims=True)
            out = (out - cmx) - jnp.log(ssum)   # padded lanes are junk; sliced off

        o_ref[g] = out


# ---------------------------------------------------------------------------
# Jitted dense forward (static shapes); dynamic row-select stays outside jit.
# ---------------------------------------------------------------------------

@functools.partial(jax.jit, static_argnames=("task_type", "self_loop", "app_adj"))
def _cocn_dense_forward(params, features, adj, mask, *, task_type, self_loop, app_adj):
    B, N, F = features.shape
    H = params["w0"].shape[-1]
    C = params["w2"].shape[-1]
    C_pad = _round_up(max(C, 128), 128)            # lane-dense output store

    mask = mask.astype(jnp.float32)                # (B, N, 1)
    mask_row = jnp.swapaxes(mask, -1, -2)          # (B, 1, N)
    # Fuse masking into the input casts (one XLA elementwise pass each); ship
    # the dominant (B,N,N) adjacency stream as bf16 (0/1 entries are exact).
    x = features.astype(jnp.float32) * mask                                 # (B, N, F)
    a_bf = (adj.astype(jnp.float32) * mask * mask_row).astype(jnp.bfloat16)  # (B, N, N)

    wagg_row = params["w_agg"].astype(jnp.float32).reshape(1, F)
    wself_row = params["w_self"].astype(jnp.float32).reshape(1, F)
    w0 = params["w0"].astype(jnp.float32)
    w1 = params["w1"].astype(jnp.float32)
    if app_adj:
        w01 = jnp.concatenate([w0, w1], axis=0)            # (4F, H)
    else:
        w01 = jnp.concatenate([w0[:F], w1[:F]], axis=0)    # (2F, H)
    Kcat = w01.shape[0]
    w2p = jnp.zeros((H, C_pad), jnp.float32).at[:, :C].set(
        params["w2"].astype(jnp.float32))

    GB = _pick_graphs_per_block(B, N)
    kernel = functools.partial(
        _cocn_fused_kernel,
        graphs_per_block=GB,
        n_classes=C,
        self_loop=float(self_loop),
        app_adj=bool(app_adj),
        apply_log_softmax=("single-class" in task_type),
    )

    # TODO(synk): for very large N (single-graph (N,N) block exceeding v7x's
    # 64 MiB VMEM) add a 256-row node-tile grid axis ('arbitrary') with VMEM
    # accumulators; at the sizes handled here whole graphs fit per block.
    out = pl.pallas_call(
        kernel,
        grid=(B // GB,),
        in_specs=[
            pl.BlockSpec((GB, N, 1), lambda b: (b, 0, 0)),     # node mask (column)
            pl.BlockSpec((GB, 1, N), lambda b: (b, 0, 0)),     # node mask (row)
            pl.BlockSpec((GB, N, F), lambda b: (b, 0, 0)),     # masked features (f32)
            pl.BlockSpec((GB, N, N), lambda b: (b, 0, 0)),     # masked adjacency (bf16)
            pl.BlockSpec((1, F), lambda b: (0, 0)),            # w_agg row
            pl.BlockSpec((1, F), lambda b: (0, 0)),            # w_self row
            pl.BlockSpec((Kcat, H), lambda b: (0, 0)),         # stacked [w0; w1]
            pl.BlockSpec((H, C_pad), lambda b: (0, 0)),        # w2 (lane padded)
        ],
        out_specs=pl.BlockSpec((GB, N, C_pad), lambda b: (b, 0, 0)),
        out_shape=jax.ShapeDtypeStruct((B, N, C_pad), jnp.float32),
        compiler_params=pltpu.CompilerParams(
            # batch-block axis shards across the 2 TensorCores on v7x
            dimension_semantics=("parallel",),
            vmem_limit_bytes=_vmem_limit_bytes(),
        ),
    )(mask, mask_row, x, a_bf, wagg_row, wself_row, w01, w2p)

    return out[:, :, :C]                           # drop lane padding


# ---------------------------------------------------------------------------
# CoCN module (mirrors the PyTorch forward on dense inputs)
# ---------------------------------------------------------------------------

class CoCN:
    def __init__(self, params, task_type="single-class", self_loop=1, app_adj=False):
        self.params = params
        self.task_type = task_type
        self.self_loop = self_loop
        self.app_adj = app_adj
        # TODO(synk): pre_encoder / positional-encoding paths and the sparse
        # edge_index -> dense preprocessing (to_dense_batch / to_dense_adj /
        # get_normalized_adj) are host-side graph glue, not kernels; inputs
        # here are already dense.

    def __call__(self, features, adj, mask):
        out = _cocn_dense_forward(
            self.params, features, adj, mask,
            task_type=self.task_type,
            self_loop=float(self.self_loop),
            app_adj=bool(self.app_adj),
        )                                          # (B, N, C), fully jitted

        # Reference: output.flatten(0,1)[mask] then log_softmax.  Log-softmax is
        # row-wise, so it is applied inside the kernel; only the dynamic-shape
        # boolean row-select runs eagerly here.
        out_flat = out.reshape(-1, out.shape[-1])
        mask_flat = mask.reshape(-1) > 0
        out_sel = out_flat[mask_flat]
        if "single-class" in self.task_type:
            pass                                   # log-softmax already applied
        elif self.task_type in ["multi-class", "reg", "binary-class"]:
            pass
        elif "link" in self.task_type:
            # TODO(synk): 'link' task needs edge_label_index gathers (host glue).
            raise NotImplementedError("link task not implemented")
        else:
            raise ValueError("Unsupported task type " + self.task_type)
        return out_sel


# ---------------------------------------------------------------------------
# Main
# ---------------------------------------------------------------------------

if __name__ == "__main__":
    B, N, F, H, C = 2, 16, 8, 32, 4

    key = jax.random.PRNGKey(0)
    kf, ka, k1, k2, k3, k4, k5 = jax.random.split(key, 7)

    features = jax.random.normal(kf, (B, N, F), dtype=jnp.float32)
    a_rand = jax.random.uniform(ka, (B, N, N))
    adj = (a_rand < 0.25).astype(jnp.float32)
    adj = jnp.maximum(adj, jnp.swapaxes(adj, -1, -2))        # symmetric
    adj = adj * (1.0 - jnp.eye(N, dtype=jnp.float32)[None])  # self-loops added in-kernel

    valid = jnp.array([N, 12])                               # batch 1 has 12 valid nodes
    mask = (jnp.arange(N)[None, :] < valid[:, None]).astype(jnp.float32)[..., None]

    params = {
        "w_agg": 0.1 * jax.random.normal(k1, (F, 1), dtype=jnp.float32),
        "w_self": 0.1 * jax.random.normal(k2, (F, 1), dtype=jnp.float32),
        "w0": 0.1 * jax.random.normal(k3, (2 * F, H), dtype=jnp.float32),
        "w1": 0.1 * jax.random.normal(k4, (2 * F, H), dtype=jnp.float32),
        "w2": 0.1 * jax.random.normal(k5, (H, C), dtype=jnp.float32),
    }

    model = CoCN(params, task_type="single-class", self_loop=1, app_adj=True)
    out = model(features, adj, mask)
    jax.block_until_ready(out)
    assert out.shape == (int(valid.sum()), C)
    print("KERNEL_OK")
</pallas_src>

<mosaic_0001>
module attributes {stable_mosaic.version = 11 : i64} {
  func.func @_cocn_fused_kernel(%arg0: i32, %arg1: memref<2x16x1xf32, #tpu.memory_space<vmem>>, %arg2: memref<2x1x16xf32, #tpu.memory_space<vmem>>, %arg3: memref<2x16x8xf32, #tpu.memory_space<vmem>>, %arg4: memref<2x16x16xbf16, #tpu.memory_space<vmem>>, %arg5: memref<1x8xf32, #tpu.memory_space<vmem>>, %arg6: memref<1x8xf32, #tpu.memory_space<vmem>>, %arg7: memref<32x32xf32, #tpu.memory_space<vmem>>, %arg8: memref<32x128xf32, #tpu.memory_space<vmem>>, %arg9: memref<2x16x128xf32, #tpu.memory_space<vmem>>) attributes {dimension_semantics = [#tpu.dimension_semantics<parallel>], iteration_bounds = array<i64: 1>, scalar_prefetch = 0 : i64, scratch_operands = 0 : i64, tpu.core_type = #tpu.core_type<tc>, window_params = [{transform_indices = @transform_0, window_bounds = array<i64: 2, 16, 1>}, {transform_indices = @transform_1, window_bounds = array<i64: 2, 1, 16>}, {transform_indices = @transform_2, window_bounds = array<i64: 2, 16, 8>}, {transform_indices = @transform_3, window_bounds = array<i64: 2, 16, 16>}, {pipeline_mode = #tpu.pipeline_mode<synchronous>, transform_indices = @transform_4, window_bounds = array<i64: 1, 8>}, {pipeline_mode = #tpu.pipeline_mode<synchronous>, transform_indices = @transform_5, window_bounds = array<i64: 1, 8>}, {pipeline_mode = #tpu.pipeline_mode<synchronous>, transform_indices = @transform_6, window_bounds = array<i64: 32, 32>}, {pipeline_mode = #tpu.pipeline_mode<synchronous>, transform_indices = @transform_7, window_bounds = array<i64: 32, 128>}, {transform_indices = @transform_8, window_bounds = array<i64: 2, 16, 128>}]} {
    %c0 = arith.constant 0 : index
    %c0_0 = arith.constant 0 : index
    %0 = vector.load %arg5[%c0, %c0_0] : memref<1x8xf32, #tpu.memory_space<vmem>>, vector<1x8xf32>
    %c0_1 = arith.constant 0 : index
    %c0_2 = arith.constant 0 : index
    %1 = vector.load %arg6[%c0_1, %c0_2] : memref<1x8xf32, #tpu.memory_space<vmem>>, vector<1x8xf32>
    %c0_3 = arith.constant 0 : index
    %c0_4 = arith.constant 0 : index
    %2 = vector.load %arg7[%c0_3, %c0_4] : memref<32x32xf32, #tpu.memory_space<vmem>>, vector<32x32xf32>
    %3 = arith.truncf %2 : vector<32x32xf32> to vector<32x32xbf16>
    %c0_5 = arith.constant 0 : index
    %c0_6 = arith.constant 0 : index
    %4 = vector.load %arg8[%c0_5, %c0_6] : memref<32x128xf32, #tpu.memory_space<vmem>>, vector<32x128xf32>
    %5 = arith.truncf %4 : vector<32x128xf32> to vector<32x128xbf16>
    %c0_7 = arith.constant 0 : index
    %c0_8 = arith.constant 0 : index
    %c0_9 = arith.constant 0 : index
    %6 = vector.load %arg1[%c0_7, %c0_8, %c0_9] : memref<2x16x1xf32, #tpu.memory_space<vmem>>, vector<1x16x1xf32>
    %7 = vector.shape_cast %6 : vector<1x16x1xf32> to vector<16x1xf32>
    %c0_10 = arith.constant 0 : index
    %c0_11 = arith.constant 0 : index
    %c0_12 = arith.constant 0 : index
    %8 = vector.load %arg2[%c0_10, %c0_11, %c0_12] : memref<2x1x16xf32, #tpu.memory_space<vmem>>, vector<1x1x16xf32>
    %9 = vector.shape_cast %8 : vector<1x1x16xf32> to vector<1x16xf32>
    %c0_13 = arith.constant 0 : index
    %c0_14 = arith.constant 0 : index
    %c0_15 = arith.constant 0 : index
    %10 = vector.load %arg3[%c0_13, %c0_14, %c0_15] : memref<2x16x8xf32, #tpu.memory_space<vmem>>, vector<1x16x8xf32>
    %11 = vector.shape_cast %10 : vector<1x16x8xf32> to vector<16x8xf32>
    %c0_16 = arith.constant 0 : index
    %c0_17 = arith.constant 0 : index
    %c0_18 = arith.constant 0 : index
    %12 = vector.load %arg4[%c0_16, %c0_17, %c0_18] : memref<2x16x16xbf16, #tpu.memory_space<vmem>>, vector<1x16x16xbf16>
    %13 = vector.shape_cast %12 : vector<1x16x16xbf16> to vector<16x16xbf16>
    %14 = arith.extf %13 : vector<16x16xbf16> to vector<16x16xf32>
    %cst = arith.constant dense<0.000000e+00> : vector<16xf32>
    %15 = vector.multi_reduction <add>, %14, %cst [1] : vector<16x16xf32> to vector<16xf32>
    %16 = vector.shape_cast %15 : vector<16xf32> to vector<16x1xf32>
    %cst_19 = arith.constant 1.000000e+00 : f32
    %17 = vector.broadcast %cst_19 : f32 to vector<16x1xf32>
    %18 = arith.mulf %17, %7 : vector<16x1xf32>
    %19 = arith.addf %16, %18 : vector<16x1xf32>
    %cst_20 = arith.constant 0.000000e+00 : f32
    %20 = vector.broadcast %cst_20 : f32 to vector<16x1xf32>
    %21 = arith.cmpf ogt, %19, %20 : vector<16x1xf32>
    %22 = math.rsqrt %19 : vector<16x1xf32>
    %cst_21 = arith.constant 0.000000e+00 : f32
    %23 = vector.broadcast %cst_21 : f32 to vector<16x1xf32>
    %24 = arith.select %21, %22, %23 : vector<16x1xi1>, vector<16x1xf32>
    %25 = vector.broadcast %24 : vector<16x1xf32> to vector<16x8xf32>
    %26 = arith.mulf %25, %11 : vector<16x8xf32>
    %27 = arith.truncf %26 : vector<16x8xf32> to vector<16x8xbf16>
    %cst_22 = arith.constant dense<0.000000e+00> : vector<16x8xf32>
    %28 = tpu.matmul %13, %27, %cst_22 {dimension_numbers = #tpu.dot_dimension_numbers<[1], [0], [0], [1], [0, 0, 1, 1], [], []>} : vector<16x16xbf16>, vector<16x8xbf16>, vector<16x8xf32> -> vector<16x8xf32>
    %cst_23 = arith.constant 1.000000e+00 : f32
    %29 = vector.broadcast %cst_23 : f32 to vector<16x8xf32>
    %30 = arith.mulf %29, %26 : vector<16x8xf32>
    %31 = arith.addf %28, %30 : vector<16x8xf32>
    %32 = vector.broadcast %24 : vector<16x1xf32> to vector<16x8xf32>
    %33 = arith.mulf %32, %31 : vector<16x8xf32>
    %34 = vector.broadcast %0 : vector<1x8xf32> to vector<16x8xf32>
    %35 = arith.mulf %33, %34 : vector<16x8xf32>
    %cst_24 = arith.constant dense<0.000000e+00> : vector<16xf32>
    %36 = vector.multi_reduction <add>, %35, %cst_24 [1] : vector<16x8xf32> to vector<16xf32>
    %37 = vector.shape_cast %36 : vector<16xf32> to vector<16x1xf32>
    %38 = vector.broadcast %1 : vector<1x8xf32> to vector<16x8xf32>
    %39 = arith.mulf %11, %38 : vector<16x8xf32>
    %cst_25 = arith.constant dense<0.000000e+00> : vector<16xf32>
    %40 = vector.multi_reduction <add>, %39, %cst_25 [1] : vector<16x8xf32> to vector<16xf32>
    %41 = vector.shape_cast %40 : vector<16xf32> to vector<16x1xf32>
    %42 = arith.addf %37, %41 : vector<16x1xf32>
    %43 = math.tanh %42 : vector<16x1xf32>
    %44 = tpu.transpose %43, [1, 0] : vector<16x1xf32> -> vector<1x16xf32>
    %45 = vector.broadcast %44 : vector<1x16xf32> to vector<16x16xf32>
    %46 = vector.broadcast %43 : vector<16x1xf32> to vector<16x16xf32>
    %47 = arith.subf %45, %46 : vector<16x16xf32>
    %cst_26 = arith.constant -1.000000e+01 : f32
    %48 = vector.broadcast %cst_26 : f32 to vector<16x16xf32>
    %49 = arith.mulf %48, %47 : vector<16x16xf32>
    %50 = math.exp %49 : vector<16x16xf32>
    %cst_27 = arith.constant 1.000000e+00 : f32
    %51 = vector.broadcast %cst_27 : f32 to vector<16x16xf32>
    %52 = arith.addf %51, %50 : vector<16x16xf32>
    %cst_28 = arith.constant 1.000000e+00 : f32
    %53 = vector.broadcast %cst_28 : f32 to vector<16x16xf32>
    %54 = arith.divf %53, %52 : vector<16x16xf32>
    %55 = vector.broadcast %7 : vector<16x1xf32> to vector<16x16xf32>
    %56 = arith.mulf %54, %55 : vector<16x16xf32>
    %cst_29 = arith.constant dense<0.000000e+00> : vector<16xf32>
    %57 = vector.multi_reduction <add>, %56, %cst_29 [0] : vector<16x16xf32> to vector<16xf32>
    %58 = vector.shape_cast %57 : vector<16xf32> to vector<1x16xf32>
    %59 = tpu.iota {dimensions = array<i32: 0>} : vector<16x16xi32>
    %60 = arith.sitofp %59 : vector<16x16xi32> to vector<16x16xf32>
    %cst_30 = arith.constant 1.000000e+00 : f32
    %61 = vector.broadcast %cst_30 : f32 to vector<1x16xf32>
    %62 = arith.subf %9, %61 : vector<1x16xf32>
    %cst_31 = arith.constant 1.000000e+09 : f32
    %63 = vector.broadcast %cst_31 : f32 to vector<1x16xf32>
    %64 = arith.mulf %62, %63 : vector<1x16xf32>
    %65 = vector.broadcast %58 : vector<1x16xf32> to vector<16x16xf32>
    %66 = arith.subf %65, %60 : vector<16x16xf32>
    %67 = arith.mulf %66, %66 : vector<16x16xf32>
    %68 = vector.broadcast %64 : vector<1x16xf32> to vector<16x16xf32>
    %69 = arith.subf %68, %67 : vector<16x16xf32>
    %cst_32 = arith.constant dense<0xFF800000> : vector<16xf32>
    %70 = vector.multi_reduction <maximumf>, %69, %cst_32 [1] : vector<16x16xf32> to vector<16xf32>
    %71 = vector.shape_cast %70 : vector<16xf32> to vector<16x1xf32>
    %72 = vector.broadcast %71 : vector<16x1xf32> to vector<16x16xf32>
    %73 = arith.subf %69, %72 : vector<16x16xf32>
    %74 = math.exp %73 : vector<16x16xf32>
    %cst_33 = arith.constant dense<0.000000e+00> : vector<16xf32>
    %75 = vector.multi_reduction <add>, %74, %cst_33 [1] : vector<16x16xf32> to vector<16xf32>
    %76 = vector.shape_cast %75 : vector<16xf32> to vector<16x1xf32>
    %77 = tpu.reciprocal %76 {approx = true} : vector<16x1xf32> -> vector<16x1xf32>
    %78 = vector.broadcast %77 : vector<16x1xf32> to vector<16x16xf32>
    %79 = arith.mulf %74, %78 : vector<16x16xf32>
    %80 = arith.truncf %79 : vector<16x16xf32> to vector<16x16xbf16>
    %81 = tpu.transpose %79, [1, 0] : vector<16x16xf32> -> vector<16x16xf32>
    %82 = arith.truncf %81 : vector<16x16xf32> to vector<16x16xbf16>
    %83 = tpu.concatenate %11, %33 in 1 : vector<16x8xf32>, vector<16x8xf32> -> vector<16x16xf32>
    %84 = arith.truncf %83 : vector<16x16xf32> to vector<16x16xbf16>
    %cst_34 = arith.constant dense<0.000000e+00> : vector<16x16xf32>
    %85 = tpu.matmul %80, %84, %cst_34 {dimension_numbers = #tpu.dot_dimension_numbers<[1], [0], [0], [1], [0, 0, 1, 1], [], []>} : vector<16x16xbf16>, vector<16x16xbf16>, vector<16x16xf32> -> vector<16x16xf32>
    %86 = arith.truncf %85 : vector<16x16xf32> to vector<16x16xbf16>
    %cst_35 = arith.constant dense<0.000000e+00> : vector<16x16xf32>
    %87 = tpu.matmul %82, %86, %cst_35 {dimension_numbers = #tpu.dot_dimension_numbers<[1], [0], [0], [1], [0, 0, 1, 1], [], []>} : vector<16x16xbf16>, vector<16x16xbf16>, vector<16x16xf32> -> vector<16x16xf32>
    %88 = arith.truncf %87 : vector<16x16xf32> to vector<16x16xbf16>
    %cst_36 = arith.constant dense<0.000000e+00> : vector<16x16xf32>
    %89 = tpu.matmul %13, %88, %cst_36 {dimension_numbers = #tpu.dot_dimension_numbers<[1], [0], [0], [1], [0, 0, 1, 1], [], []>} : vector<16x16xbf16>, vector<16x16xbf16>, vector<16x16xf32> -> vector<16x16xf32>
    %90 = arith.truncf %89 : vector<16x16xf32> to vector<16x16xbf16>
    %cst_37 = arith.constant dense<0.000000e+00> : vector<16x16xf32>
    %91 = tpu.matmul %80, %90, %cst_37 {dimension_numbers = #tpu.dot_dimension_numbers<[1], [0], [0], [1], [0, 0, 1, 1], [], []>} : vector<16x16xbf16>, vector<16x16xbf16>, vector<16x16xf32> -> vector<16x16xf32>
    %92 = tpu.concatenate %85, %91 in 1 : vector<16x16xf32>, vector<16x16xf32> -> vector<16x32xf32>
    %93 = arith.truncf %92 : vector<16x32xf32> to vector<16x32xbf16>
    %cst_38 = arith.constant dense<0.000000e+00> : vector<16x32xf32>
    %94 = tpu.matmul %93, %3, %cst_38 {dimension_numbers = #tpu.dot_dimension_numbers<[1], [0], [0], [1], [0, 0, 1, 1], [], []>} : vector<16x32xbf16>, vector<32x32xbf16>, vector<16x32xf32> -> vector<16x32xf32>
    %cst_39 = arith.constant 0.000000e+00 : f32
    %95 = vector.broadcast %cst_39 : f32 to vector<16x32xf32>
    %96 = arith.maximumf %94, %95 : vector<16x32xf32>
    %97 = arith.truncf %96 : vector<16x32xf32> to vector<16x32xbf16>
    %cst_40 = arith.constant dense<0.000000e+00> : vector<16x128xf32>
    %98 = tpu.matmul %97, %5, %cst_40 {dimension_numbers = #tpu.dot_dimension_numbers<[1], [0], [0], [1], [0, 0, 1, 1], [], []>} : vector<16x32xbf16>, vector<32x128xbf16>, vector<16x128xf32> -> vector<16x128xf32>
    %99 = tpu.iota {dimensions = array<i32: 1>} : vector<16x128xi32>
    %c4_i32 = arith.constant 4 : i32
    %100 = vector.broadcast %c4_i32 : i32 to vector<16x128xi32>
    %101 = arith.cmpi slt, %99, %100 : vector<16x128xi32>
    %cst_41 = arith.constant -1.000000e+30 : f32
    %102 = vector.broadcast %cst_41 : f32 to vector<16x128xf32>
    %103 = arith.select %101, %98, %102 : vector<16x128xi1>, vector<16x128xf32>
    %cst_42 = arith.constant dense<0xFF800000> : vector<16xf32>
    %104 = vector.multi_reduction <maximumf>, %103, %cst_42 [1] : vector<16x128xf32> to vector<16xf32>
    %105 = vector.shape_cast %104 : vector<16xf32> to vector<16x1xf32>
    %106 = vector.broadcast %105 : vector<16x1xf32> to vector<16x128xf32>
    %107 = arith.subf %103, %106 : vector<16x128xf32>
    %108 = math.exp %107 : vector<16x128xf32>
    %cst_43 = arith.constant 0.000000e+00 : f32
    %109 = vector.broadcast %cst_43 : f32 to vector<16x128xf32>
    %110 = arith.select %101, %108, %109 : vector<16x128xi1>, vector<16x128xf32>
    %cst_44 = arith.constant dense<0.000000e+00> : vector<16xf32>
    %111 = vector.multi_reduction <add>, %110, %cst_44 [1] : vector<16x128xf32> to vector<16xf32>
    %112 = vector.shape_cast %111 : vector<16xf32> to vector<16x1xf32>
    %113 = vector.broadcast %105 : vector<16x1xf32> to vector<16x128xf32>
    %114 = arith.subf %98, %113 : vector<16x128xf32>
    %115 = math.log %112 : vector<16x1xf32>
    %116 = vector.broadcast %115 : vector<16x1xf32> to vector<16x128xf32>
    %117 = arith.subf %114, %116 : vector<16x128xf32>
    %c0_45 = arith.constant 0 : index
    %c0_46 = arith.constant 0 : index
    %c0_47 = arith.constant 0 : index
    %118 = vector.load %arg9[%c0_45, %c0_46, %c0_47] : memref<2x16x128xf32, #tpu.memory_space<vmem>>, vector<1x16x128xf32>
    %119 = vector.shape_cast %118 : vector<1x16x128xf32> to vector<16x128xf32>
    %120 = vector.shape_cast %117 : vector<16x128xf32> to vector<1x16x128xf32>
    tpu.vector_store %arg9[%c0_45, %c0_46, %c0_47], %120 {strides = array<i32>} : memref<2x16x128xf32, #tpu.memory_space<vmem>>, vector<1x16x128xf32>,
    %c1 = arith.constant 1 : index
    %c0_48 = arith.constant 0 : index
    %c0_49 = arith.constant 0 : index
    %121 = vector.load %arg1[%c1, %c0_48, %c0_49] : memref<2x16x1xf32, #tpu.memory_space<vmem>>, vector<1x16x1xf32>
    %122 = vector.shape_cast %121 : vector<1x16x1xf32> to vector<16x1xf32>
    %c1_50 = arith.constant 1 : index
    %c0_51 = arith.constant 0 : index
    %c0_52 = arith.constant 0 : index
    %123 = vector.load %arg2[%c1_50, %c0_51, %c0_52] : memref<2x1x16xf32, #tpu.memory_space<vmem>>, vector<1x1x16xf32>
    %124 = vector.shape_cast %123 : vector<1x1x16xf32> to vector<1x16xf32>
    %c1_53 = arith.constant 1 : index
    %c0_54 = arith.constant 0 : index
    %c0_55 = arith.constant 0 : index
    %125 = vector.load %arg3[%c1_53, %c0_54, %c0_55] : memref<2x16x8xf32, #tpu.memory_space<vmem>>, vector<1x16x8xf32>
    %126 = vector.shape_cast %125 : vector<1x16x8xf32> to vector<16x8xf32>
    %c1_56 = arith.constant 1 : index
    %c0_57 = arith.constant 0 : index
    %c0_58 = arith.constant 0 : index
    %127 = vector.load %arg4[%c1_56, %c0_57, %c0_58] : memref<2x16x16xbf16, #tpu.memory_space<vmem>>, vector<1x16x16xbf16>
    %128 = vector.shape_cast %127 : vector<1x16x16xbf16> to vector<16x16xbf16>
    %129 = arith.extf %128 : vector<16x16xbf16> to vector<16x16xf32>
    %cst_59 = arith.constant dense<0.000000e+00> : vector<16xf32>
    %130 = vector.multi_reduction <add>, %129, %cst_59 [1] : vector<16x16xf32> to vector<16xf32>
    %131 = vector.shape_cast %130 : vector<16xf32> to vector<16x1xf32>
    %cst_60 = arith.constant 1.000000e+00 : f32
    %132 = vector.broadcast %cst_60 : f32 to vector<16x1xf32>
    %133 = arith.mulf %132, %122 : vector<16x1xf32>
    %134 = arith.addf %131, %133 : vector<16x1xf32>
    %cst_61 = arith.constant 0.000000e+00 : f32
    %135 = vector.broadcast %cst_61 : f32 to vector<16x1xf32>
    %136 = arith.cmpf ogt, %134, %135 : vector<16x1xf32>
    %137 = math.rsqrt %134 : vector<16x1xf32>
    %cst_62 = arith.constant 0.000000e+00 : f32
    %138 = vector.broadcast %cst_62 : f32 to vector<16x1xf32>
    %139 = arith.select %136, %137, %138 : vector<16x1xi1>, vector<16x1xf32>
    %140 = vector.broadcast %139 : vector<16x1xf32> to vector<16x8xf32>
    %141 = arith.mulf %140, %126 : vector<16x8xf32>
    %142 = arith.truncf %141 : vector<16x8xf32> to vector<16x8xbf16>
    %cst_63 = arith.constant dense<0.000000e+00> : vector<16x8xf32>
    %143 = tpu.matmul %128, %142, %cst_63 {dimension_numbers = #tpu.dot_dimension_numbers<[1], [0], [0], [1], [0, 0, 1, 1], [], []>} : vector<16x16xbf16>, vector<16x8xbf16>, vector<16x8xf32> -> vector<16x8xf32>
    %cst_64 = arith.constant 1.000000e+00 : f32
    %144 = vector.broadcast %cst_64 : f32 to vector<16x8xf32>
    %145 = arith.mulf %144, %141 : vector<16x8xf32>
    %146 = arith.addf %143, %145 : vector<16x8xf32>
    %147 = vector.broadcast %139 : vector<16x1xf32> to vector<16x8xf32>
    %148 = arith.mulf %147, %146 : vector<16x8xf32>
    %149 = vector.broadcast %0 : vector<1x8xf32> to vector<16x8xf32>
    %150 = arith.mulf %148, %149 : vector<16x8xf32>
    %cst_65 = arith.constant dense<0.000000e+00> : vector<16xf32>
    %151 = vector.multi_reduction <add>, %150, %cst_65 [1] : vector<16x8xf32> to vector<16xf32>
    %152 = vector.shape_cast %151 : vector<16xf32> to vector<16x1xf32>
    %153 = vector.broadcast %1 : vector<1x8xf32> to vector<16x8xf32>
    %154 = arith.mulf %126, %153 : vector<16x8xf32>
    %cst_66 = arith.constant dense<0.000000e+00> : vector<16xf32>
    %155 = vector.multi_reduction <add>, %154, %cst_66 [1] : vector<16x8xf32> to vector<16xf32>
    %156 = vector.shape_cast %155 : vector<16xf32> to vector<16x1xf32>
    %157 = arith.addf %152, %156 : vector<16x1xf32>
    %158 = math.tanh %157 : vector<16x1xf32>
    %159 = tpu.transpose %158, [1, 0] : vector<16x1xf32> -> vector<1x16xf32>
    %160 = vector.broadcast %159 : vector<1x16xf32> to vector<16x16xf32>
    %161 = vector.broadcast %158 : vector<16x1xf32> to vector<16x16xf32>
    %162 = arith.subf %160, %161 : vector<16x16xf32>
    %cst_67 = arith.constant -1.000000e+01 : f32
    %163 = vector.broadcast %cst_67 : f32 to vector<16x16xf32>
    %164 = arith.mulf %163, %162 : vector<16x16xf32>
    %165 = math.exp %164 : vector<16x16xf32>
    %cst_68 = arith.constant 1.000000e+00 : f32
    %166 = vector.broadcast %cst_68 : f32 to vector<16x16xf32>
    %167 = arith.addf %166, %165 : vector<16x16xf32>
    %cst_69 = arith.constant 1.000000e+00 : f32
    %168 = vector.broadcast %cst_69 : f32 to vector<16x16xf32>
    %169 = arith.divf %168, %167 : vector<16x16xf32>
    %170 = vector.broadcast %122 : vector<16x1xf32> to vector<16x16xf32>
    %171 = arith.mulf %169, %170 : vector<16x16xf32>
    %cst_70 = arith.constant dense<0.000000e+00> : vector<16xf32>
    %172 = vector.multi_reduction <add>, %171, %cst_70 [0] : vector<16x16xf32> to vector<16xf32>
    %173 = vector.shape_cast %172 : vector<16xf32> to vector<1x16xf32>
    %174 = tpu.iota {dimensions = array<i32: 0>} : vector<16x16xi32>
    %175 = arith.sitofp %174 : vector<16x16xi32> to vector<16x16xf32>
    %cst_71 = arith.constant 1.000000e+00 : f32
    %176 = vector.broadcast %cst_71 : f32 to vector<1x16xf32>
    %177 = arith.subf %124, %176 : vector<1x16xf32>
    %cst_72 = arith.constant 1.000000e+09 : f32
    %178 = vector.broadcast %cst_72 : f32 to vector<1x16xf32>
    %179 = arith.mulf %177, %178 : vector<1x16xf32>
    %180 = vector.broadcast %173 : vector<1x16xf32> to vector<16x16xf32>
    %181 = arith.subf %180, %175 : vector<16x16xf32>
    %182 = arith.mulf %181, %181 : vector<16x16xf32>
    %183 = vector.broadcast %179 : vector<1x16xf32> to vector<16x16xf32>
    %184 = arith.subf %183, %182 : vector<16x16xf32>
    %cst_73 = arith.constant dense<0xFF800000> : vector<16xf32>
    %185 = vector.multi_reduction <maximumf>, %184, %cst_73 [1] : vector<16x16xf32> to vector<16xf32>
    %186 = vector.shape_cast %185 : vector<16xf32> to vector<16x1xf32>
    %187 = vector.broadcast %186 : vector<16x1xf32> to vector<16x16xf32>
    %188 = arith.subf %184, %187 : vector<16x16xf32>
    %189 = math.exp %188 : vector<16x16xf32>
    %cst_74 = arith.constant dense<0.000000e+00> : vector<16xf32>
    %190 = vector.multi_reduction <add>, %189, %cst_74 [1] : vector<16x16xf32> to vector<16xf32>
    %191 = vector.shape_cast %190 : vector<16xf32> to vector<16x1xf32>
    %192 = tpu.reciprocal %191 {approx = true} : vector<16x1xf32> -> vector<16x1xf32>
    %193 = vector.broadcast %192 : vector<16x1xf32> to vector<16x16xf32>
    %194 = arith.mulf %189, %193 : vector<16x16xf32>
    %195 = arith.truncf %194 : vector<16x16xf32> to vector<16x16xbf16>
    %196 = tpu.transpose %194, [1, 0] : vector<16x16xf32> -> vector<16x16xf32>
    %197 = arith.truncf %196 : vector<16x16xf32> to vector<16x16xbf16>
    %198 = tpu.concatenate %126, %148 in 1 : vector<16x8xf32>, vector<16x8xf32> -> vector<16x16xf32>
    %199 = arith.truncf %198 : vector<16x16xf32> to vector<16x16xbf16>
    %cst_75 = arith.constant dense<0.000000e+00> : vector<16x16xf32>
    %200 = tpu.matmul %195, %199, %cst_75 {dimension_numbers = #tpu.dot_dimension_numbers<[1], [0], [0], [1], [0, 0, 1, 1], [], []>} : vector<16x16xbf16>, vector<16x16xbf16>, vector<16x16xf32> -> vector<16x16xf32>
    %201 = arith.truncf %200 : vector<16x16xf32> to vector<16x16xbf16>
    %cst_76 = arith.constant dense<0.000000e+00> : vector<16x16xf32>
    %202 = tpu.matmul %197, %201, %cst_76 {dimension_numbers = #tpu.dot_dimension_numbers<[1], [0], [0], [1], [0, 0, 1, 1], [], []>} : vector<16x16xbf16>, vector<16x16xbf16>, vector<16x16xf32> -> vector<16x16xf32>
    %203 = arith.truncf %202 : vector<16x16xf32> to vector<16x16xbf16>
    %cst_77 = arith.constant dense<0.000000e+00> : vector<16x16xf32>
    %204 = tpu.matmul %128, %203, %cst_77 {dimension_numbers = #tpu.dot_dimension_numbers<[1], [0], [0], [1], [0, 0, 1, 1], [], []>} : vector<16x16xbf16>, vector<16x16xbf16>, vector<16x16xf32> -> vector<16x16xf32>
    %205 = arith.truncf %204 : vector<16x16xf32> to vector<16x16xbf16>
    %cst_78 = arith.constant dense<0.000000e+00> : vector<16x16xf32>
    %206 = tpu.matmul %195, %205, %cst_78 {dimension_numbers = #tpu.dot_dimension_numbers<[1], [0], [0], [1], [0, 0, 1, 1], [], []>} : vector<16x16xbf16>, vector<16x16xbf16>, vector<16x16xf32> -> vector<16x16xf32>
    %207 = tpu.concatenate %200, %206 in 1 : vector<16x16xf32>, vector<16x16xf32> -> vector<16x32xf32>
    %208 = arith.truncf %207 : vector<16x32xf32> to vector<16x32xbf16>
    %cst_79 = arith.constant dense<0.000000e+00> : vector<16x32xf32>
    %209 = tpu.matmul %208, %3, %cst_79 {dimension_numbers = #tpu.dot_dimension_numbers<[1], [0], [0], [1], [0, 0, 1, 1], [], []>} : vector<16x32xbf16>, vector<32x32xbf16>, vector<16x32xf32> -> vector<16x32xf32>
    %cst_80 = arith.constant 0.000000e+00 : f32
    %210 = vector.broadcast %cst_80 : f32 to vector<16x32xf32>
    %211 = arith.maximumf %209, %210 : vector<16x32xf32>
    %212 = arith.truncf %211 : vector<16x32xf32> to vector<16x32xbf16>
    %cst_81 = arith.constant dense<0.000000e+00> : vector<16x128xf32>
    %213 = tpu.matmul %212, %5, %cst_81 {dimension_numbers = #tpu.dot_dimension_numbers<[1], [0], [0], [1], [0, 0, 1, 1], [], []>} : vector<16x32xbf16>, vector<32x128xbf16>, vector<16x128xf32> -> vector<16x128xf32>
    %214 = tpu.iota {dimensions = array<i32: 1>} : vector<16x128xi32>
    %c4_i32_82 = arith.constant 4 : i32
    %215 = vector.broadcast %c4_i32_82 : i32 to vector<16x128xi32>
    %216 = arith.cmpi slt, %214, %215 : vector<16x128xi32>
    %cst_83 = arith.constant -1.000000e+30 : f32
    %217 = vector.broadcast %cst_83 : f32 to vector<16x128xf32>
    %218 = arith.select %216, %213, %217 : vector<16x128xi1>, vector<16x128xf32>
    %cst_84 = arith.constant dense<0xFF800000> : vector<16xf32>
    %219 = vector.multi_reduction <maximumf>, %218, %cst_84 [1] : vector<16x128xf32> to vector<16xf32>
    %220 = vector.shape_cast %219 : vector<16xf32> to vector<16x1xf32>
    %221 = vector.broadcast %220 : vector<16x1xf32> to vector<16x128xf32>
    %222 = arith.subf %218, %221 : vector<16x128xf32>
    %223 = math.exp %222 : vector<16x128xf32>
    %cst_85 = arith.constant 0.000000e+00 : f32
    %224 = vector.broadcast %cst_85 : f32 to vector<16x128xf32>
    %225 = arith.select %216, %223, %224 : vector<16x128xi1>, vector<16x128xf32>
    %cst_86 = arith.constant dense<0.000000e+00> : vector<16xf32>
    %226 = vector.multi_reduction <add>, %225, %cst_86 [1] : vector<16x128xf32> to vector<16xf32>
    %227 = vector.shape_cast %226 : vector<16xf32> to vector<16x1xf32>
    %228 = vector.broadcast %220 : vector<16x1xf32> to vector<16x128xf32>
    %229 = arith.subf %213, %228 : vector<16x128xf32>
    %230 = math.log %227 : vector<16x1xf32>
    %231 = vector.broadcast %230 : vector<16x1xf32> to vector<16x128xf32>
    %232 = arith.subf %229, %231 : vector<16x128xf32>
    %c1_87 = arith.constant 1 : index
    %c0_88 = arith.constant 0 : index
    %c0_89 = arith.constant 0 : index
    %233 = vector.load %arg9[%c1_87, %c0_88, %c0_89] : memref<2x16x128xf32, #tpu.memory_space<vmem>>, vector<1x16x128xf32>
    %234 = vector.shape_cast %233 : vector<1x16x128xf32> to vector<16x128xf32>
    %235 = vector.shape_cast %232 : vector<16x128xf32> to vector<1x16x128xf32>
    tpu.vector_store %arg9[%c1_87, %c0_88, %c0_89], %235 {strides = array<i32>} : memref<2x16x128xf32, #tpu.memory_space<vmem>>, vector<1x16x128xf32>,
    return
  }
  func.func @transform_0(%arg0: i32) -> (i32, i32, i32) {
    %c0_i32 = arith.constant 0 : i32
    %c0_i32_0 = arith.constant 0 : i32
    %c0_i32_1 = arith.constant 0 : i32
    return %arg0, %c0_i32, %c0_i32_0 : i32, i32, i32
  }
  func.func @transform_1(%arg0: i32) -> (i32, i32, i32) {
    %c0_i32 = arith.constant 0 : i32
    %c0_i32_0 = arith.constant 0 : i32
    %c0_i32_1 = arith.constant 0 : i32
    return %arg0, %c0_i32, %c0_i32_0 : i32, i32, i32
  }
  func.func @transform_2(%arg0: i32) -> (i32, i32, i32) {
    %c0_i32 = arith.constant 0 : i32
    %c0_i32_0 = arith.constant 0 : i32
    %c0_i32_1 = arith.constant 0 : i32
    return %arg0, %c0_i32, %c0_i32_0 : i32, i32, i32
  }
  func.func @transform_3(%arg0: i32) -> (i32, i32, i32) {
    %c0_i32 = arith.constant 0 : i32
    %c0_i32_0 = arith.constant 0 : i32
    %c0_i32_1 = arith.constant 0 : i32
    return %arg0, %c0_i32, %c0_i32_0 : i32, i32, i32
  }
  func.func @transform_4(%arg0: i32) -> (i32, i32) {
    %c0_i32 = arith.constant 0 : i32
    %c0_i32_0 = arith.constant 0 : i32
    %c0_i32_1 = arith.constant 0 : i32
    return %c0_i32, %c0_i32_0 : i32, i32
  }
  func.func @transform_5(%arg0: i32) -> (i32, i32) {
    %c0_i32 = arith.constant 0 : i32
    %c0_i32_0 = arith.constant 0 : i32
    %c0_i32_1 = arith.constant 0 : i32
    return %c0_i32, %c0_i32_0 : i32, i32
  }
  func.func @transform_6(%arg0: i32) -> (i32, i32) {
    %c0_i32 = arith.constant 0 : i32
    %c0_i32_0 = arith.constant 0 : i32
    %c0_i32_1 = arith.constant 0 : i32
    return %c0_i32, %c0_i32_0 : i32, i32
  }
  func.func @transform_7(%arg0: i32) -> (i32, i32) {
    %c0_i32 = arith.constant 0 : i32
    %c0_i32_0 = arith.constant 0 : i32
    %c0_i32_1 = arith.constant 0 : i32
    return %c0_i32, %c0_i32_0 : i32, i32
  }
  func.func @transform_8(%arg0: i32) -> (i32, i32, i32) {
    %c0_i32 = arith.constant 0 : i32
    %c0_i32_0 = arith.constant 0 : i32
    %c0_i32_1 = arith.constant 0 : i32
    return %arg0, %c0_i32, %c0_i32_0 : i32, i32, i32
  }
}

</mosaic_0001>

<bundles_post_ra>
// kernel: _cocn_dense_forward.1
= control target key start
LH: loop header
LB: loop body
LE: loop exit
PB: predicated region body
PF: predicated region fallthrough
CT: control target
= control target key end

     0   :  { %vm53_vm0 = vcmask 130048   ;;  %v1448_v5 = vmov 0   ;;  %v1449_v14 = vmov 0.0   ;;  %vm1450_vm3 = vmmov 0   ;;  %s1451_s19 = smov 8   ;;  %s1452_s12 = smov 16   ;;  %s1815_s3 = inlined_call_operand.vmem [shape: bf16[2,16,16], index: 3, kind: input, shape index: {}]   ;;  %s1816_s0 = inlined_call_operand.vmem [shape: f32[2,16,1], index: 0, kind: input, shape index: {}]   ;;  %s1817_s2 = inlined_call_operand.vmem [shape: f32[2,16,8], index: 2, kind: input, shape index: {}]   ;;  %s1818_s5 = inlined_call_operand.vmem [shape: f32[1,8], index: 5, kind: input, shape index: {}]   ;;  %s1819_s4 = inlined_call_operand.vmem [shape: f32[1,8], index: 4, kind: input, shape index: {}]   ;;  %s1820_s1 = inlined_call_operand.vmem [shape: f32[2,1,16], index: 1, kind: input, shape index: {}]   ;;  %s1821_s6 = inlined_call_operand.vmem [shape: f32[32,32], index: 6, kind: input, shape index: {}]   ;;  %s1822_s7 = inlined_call_operand.vmem [shape: f32[32,128], index: 7, kind: input, shape index: {}]   ;;  %s1823_s8 = inlined_call_operand.vmem [shape: f32[2,16,128], index: 8, kind: output, shape index: {}]  }
   0x1   :  { %v1501_v0 = vld [vmem:[%s1815_s3] sm:$0xff]   ;;  %1358 = vset.pattern.permute.xlu1 %v1448_v5  ;;  %v45_v9 = vld [vmem:[%s1816_s0 + $0x8] sm:$0xff]  ;;  %1261 = vmatprep.subr.bf16.mxu0 %v1449_v14  ;;  %vm140_vm4 = vcmask 64512   ;;  %v197_v51 = vlaneseq  ;;  %vm506_vm7 = vcmask 261120  }
   0x2   :  { %v51_v1 = vunpack.c.l.bf16 %v1501_v0  ;;  %v52_v2 = vunpack.c.h.bf16 %v1501_v0  ;;  %v44_v6 = vld [vmem:[%s1816_s0] sm:$0xff]  ;;  %1267 = vmatprep.subr.bf16.mxu1 %v1449_v14  ;;  %1263 = vmatprep.mubr.msk.bf16.mxu0 %vm1450_vm3, %v1449_v14  ;;  %v1536_v22 = vld [vmem:[%s1817_s2 + $0x8] sm:$0xff] }
   0x3   :  { %1269 = vmatprep.mubr.msk.bf16.mxu1 %vm1450_vm3, %v1449_v14  ;;  %v1523_v17 = vld [vmem:[%s1818_s5] ss:$0 sm:$0xff]  ;;  %v1566_v52 = vshrl.u32 %v197_v51, 7 }
   0x4   :  { %v54_v3 = vsel %vm53_vm0, %v51_v1, 0.0  ;;  %v57_v4 = vsel %vm53_vm0, %v52_v2, 0.0  ;;  %v1528_v18 = vld [vmem:[%s1817_s2] sm:$0xff]  ;;  %v154_v39 = vmul.f32 %v1523_v17, %v1536_v22 }
   0x5   :  { %55 = vadd.xlane.f32.xlu0 %v54_v3  ;;  %v153_v19 = vmul.f32 %v1523_v17, %v1528_v18  ;;  %v1548_v30 = vld [vmem:[%s1819_s4] ss:$0 sm:$0xff]  ;;  %v1569_v53 = vsub.s32 0, %v1566_v52 }
   0x6   :  { %v158_v42 = vsel %vm140_vm4, %v154_v39, 0.0 }
   0x7   :  { %v155_v20 = vsel %vm140_vm4, %v153_v19, 0.0 }
   0x9   :  { %58 = vadd.xlane.f32.xlu0 %v57_v4 }
  0x8e   :  { %v56_v7 = vpop.xlane.xlu0 %55 }
  0x8f   :  { %v60_v8 = vadd.f32 %v56_v7, %v44_v6 }
  0x91   :  { %1384 = vrsqrt.f32 %v60_v8  ;;  %vm62_vm1 = vcmp.gt.f32.partialorder %v60_v8, 0.0 }
  0x92   :  { %v59_v10 = vpop.xlane.xlu0 %58 }
  0x93   :  { %v61_v11 = vadd.f32 %v59_v10, %v45_v9 }
  0x95   :  { %1386 = vrsqrt.f32 %v61_v11  ;;  %vm63_vm2 = vcmp.gt.f32.partialorder %v61_v11, 0.0 }
  0x9e   :  { %v1385_v12 = vpop.eup %1384 }
  0x9f   :  { %v66_v13 = vsel %vm62_vm1, %v1385_v12, 0.0 }
  0xa0   :  { %70 = vperm.xlu1 %1358, %v66_v13  }
  0xa2   :  { %v1387_v15 = vpop.eup %1386 }
  0xa3   :  { %v67_v16 = vsel %vm63_vm2, %v1387_v15, 0.0  ;;  %v46_v15 = vld [vmem:[%s1820_s1] sm:$0x1] }
  0xa4   :  { %75 = vperm.xlu1 %1358, %v67_v16  }
  0xc8   :  { %156 = vadd.xlane.f32.xlu1 %v155_v20  ;;  %v1578_v20 = vadd.s32 8, %v1566_v52 }
  0xd9   :  { %217 = vperm.xlu1 %1358, %v44_v6  }
  0xdd   :  { %222 = vperm.xlu1 %1358, %v45_v9  }
 0x11b   :  { %v71_v21 = vpop.permute.xlu1 %70 }
 0x11c   :  { %v78_v24 = vmul.f32 %v71_v21, %v1528_v18 }
 0x11f   :  { %v76_v23 = vpop.permute.xlu1 %75 }
 0x120   :  { %v79_v25 = vmul.f32 %v76_v23, %v1536_v22 }
 0x122   :  { %v80_v26 = vpack.c.bf16 %v79_v25, %v78_v24 }
 0x124   :  { %1262 = vmatpush3.bf16.msra.mxu0 %v80_v26 }
 0x125   :  { %1273 = vmatprep.subr.bf16.mxu0 %v1449_v14 }
 0x127   :  { %1264 = vmatmul.mubr.msk.bf16.vlgmr.msra.gmra.mxu0 %vm53_vm0, %v1501_v0 }
 0x128   :  { %1275 = vmatprep.mubr.msk.bf16.mxu0 %vm1450_vm3, %v1449_v14 }
 0x151   :  { %v157_v43 = vpop.xlane.xlu1 %156 }
 0x155   :  { %v218_v3 = vpop.permute.xlu1 %217 }
 0x159   :  { %v223_v7 = vpop.permute.xlu1 %222 }
 0x1e7   :  { %v123_v27 = vpop.f32.mrf.mxu0 }
 0x1e8   :  { %v124_v28 = vadd.f32 %v123_v27, %v78_v24  ;;  %v239_v27 = vcvt.s32.f32 %v1566_v52 }
 0x1e9   :  { %v1265_v29 = vpop.f32.mrf.mxu0 }
 0x1ea   :  { %v1550_v31 = vmul.f32 %v124_v28, %v71_v21  ;;  %v1204_v21 = vadd.f32 -1.0, %v46_v15 }
 0x1eb   :  { %v126_v32 = vpop.f32.mrf.mxu0 }
 0x1ec   :  { %v127_v33 = vadd.f32 %v126_v32, %v79_v25  ;;  %v138_v34 = vmul.f32 %v1548_v30, %v1550_v31  ;;  %v240_v25 = vcvt.s32.f32 %v1578_v20  ;;  %v242_v26 = vmul.f32 1e+09, %v1204_v21 }
 0x1ed   :  { %v1266_v35 = vpop.f32.mrf.mxu0 }
 0x1ee   :  { %v1554_v36 = vmul.f32 %v127_v33, %v76_v23  ;;  %v141_v37 = vsel %vm140_vm4, %v138_v34, 0.0  ;;  %v251_v32 = vrot.slane %v242_v26, %v1569_v53 }
 0x1ef   :  { %142 = vadd.xlane.f32.xlu0 %v141_v37 }
 0x1f0   :  { %v139_v38 = vmul.f32 %v1548_v30, %v1554_v36  ;;  %v1359_v40 = vpack.i.bf16 %v1554_v36, %v1550_v31 }
 0x1f2   :  { %v144_v41 = vsel %vm140_vm4, %v139_v38, 0.0 }
 0x1f3   :  { %145 = vadd.xlane.f32.xlu0 %v144_v41 }
 0x1f7   :  { %159 = vadd.xlane.f32.xlu0 %v158_v42 }
 0x278   :  { %v143_v44 = vpop.xlane.xlu0 %142 }
 0x279   :  { %v161_v45 = vadd.f32 %v157_v43, %v143_v44 }
 0x27b   :  { %1388 = vtanh.f32 %v161_v45 }
 0x27c   :  { %v146_v46 = vpop.xlane.xlu0 %145 }
 0x280   :  { %v160_v47 = vpop.xlane.xlu0 %159 }
 0x281   :  { %v162_v48 = vadd.f32 %v160_v47, %v146_v46 }
 0x283   :  { %1390 = vtanh.f32 %v162_v48 }
 0x288   :  { %v1389_v49 = vpop.eup %1388 }
 0x289   :  { %165 = vxpose.xlu0.b32.start [1/2] (short) (narrow) %v1389_v49, 8 }
 0x290   :  { %v1391_v50 = vpop.eup %1390 }
 0x291   :  { %166 = vxpose.xlu0.b32.end [2/2] (short) (narrow) %v1391_v50, 8 }
 0x309   :  { %v181_v54 = vpop.trf.xlu0 }
 0x30a   :  { %v200_v55 = vrot.slane %v181_v54, %v1569_v53 }
 0x30c   :  { %v201_v56 = vsub.f32 %v200_v55, %v1389_v49  ;;  %v202_v57 = vsub.f32 %v200_v55, %v1391_v50  ;;  %v1598_v55 = vld [vmem:[%s1815_s3 + $0x8] sm:$0xff]  }
 0x30e   :  { %v203_v58 = vmul.f32 -10.0, %v201_v56  ;;  %v204_v59 = vmul.f32 -10.0, %v202_v57  ;;  %v640_v56 = vunpack.c.l.bf16 %v1598_v55 }
 0x310   :  { %v205_v60 = vmul.f32 1.442695, %v203_v58  ;;  %v207_v61 = vmul.f32 1.442695, %v204_v59  ;;  %v642_v57 = vsel %vm53_vm0, %v640_v56, 0.0  ;;  %v641_v58 = vunpack.c.h.bf16 %v1598_v55 }
 0x312   :  { %1392 = vpow2.f32 %v205_v60  ;;  %v645_v59 = vsel %vm53_vm0, %v641_v58, 0.0 }
 0x313   :  { %1394 = vpow2.f32 %v207_v61 }
 0x31f   :  { %v1393_v62 = vpop.eup %1392 }
 0x320   :  { %v1395_v63 = vpop.eup %1394  ;;  %v209_v1 = vadd.f32 1.0, %v1393_v62 }
 0x321   :  { %v210_v2 = vadd.f32 1.0, %v1395_v63 }
 0x322   :  { %1396 = vrcp.f32 %v209_v1 }
 0x323   :  { %1398 = vrcp.f32 %v210_v2 }
 0x32f   :  { %v1397_v4 = vpop.eup %1396 }
 0x330   :  { %v1399_v6 = vpop.eup %1398  ;;  %v225_v8 = vmul.f32 %v1397_v4, %v218_v3 }
 0x331   :  { %v226_v9 = vmul.f32 %v1399_v6, %v223_v7 }
 0x332   :  { %v227_v10 = vsel %vm53_vm0, %v225_v8, 0.0 }
 0x333   :  { %v228_v11 = vsel %vm53_vm0, %v226_v9, 0.0  ;;  %v1212_v9 = vld [vmem:[%s1816_s0 + $0x18] sm:$0xff] }
 0x334   :  { %v229_v12 = vadd.f32 %v228_v11, %v227_v10 }
 0x336   :  { %v230_v13 = vrot.slane %v229_v12, 4 }
 0x338   :  { %v231_v16 = vadd.f32 %v230_v13, %v229_v12 }
 0x33a   :  { %v232_v19 = vrot.slane %v231_v16, 2 }
 0x33c   :  { %v233_v23 = vadd.f32 %v232_v19, %v231_v16 }
 0x33e   :  { %v234_v24 = vrot.slane %v233_v23, 1 }
 0x340   :  { %v235_v28 = vadd.f32 %v234_v24, %v233_v23 }
 0x342   :  { %v244_v29 = vsub.f32 %v235_v28, %v240_v25  ;;  %v243_v33 = vsub.f32 %v235_v28, %v239_v27 }
 0x344   :  { %v246_v34 = vmul.f32 %v244_v29, %v244_v29  ;;  %v245_v35 = vmul.f32 %v243_v33, %v243_v33 }
 0x346   :  { %v254_v37 = vsub.f32 %v251_v32, %v246_v34  ;;  %v253_v38 = vsub.f32 %v251_v32, %v245_v35 }
 0x348   :  { %v258_v39 = vsel %vm53_vm0, %v254_v37, -inf  ;;  %v255_v41 = vsel %vm53_vm0, %v253_v38, -inf }
 0x349   :  { %259 = vmax.xlane.f32.xlu0 %v258_v39  ;;  %256 = vmax.xlane.f32.xlu1 %v255_v41 }
 0x3d2   :  { %v260_v42 = vpop.xlane.xlu0 %259  ;;  %v257_v43 = vpop.xlane.xlu1 %256 }
 0x3d3   :  { %v262_v44 = vsub.f32 %v254_v37, %v260_v42  ;;  %v261_v45 = vsub.f32 %v253_v38, %v257_v43  ;;  %v1634_v38 = vld [vmem:[%s1817_s2 + $0x10] sm:$0xff] }
 0x3d4   :  { %v728_v39 = vmul.f32 %v1634_v38, %v1523_v17 }
 0x3d5   :  { %v263_v46 = vmul.f32 1.442695, %v261_v45  ;;  %v265_v47 = vmul.f32 1.442695, %v262_v44 }
 0x3d6   :  { %v730_v41 = vsel %vm140_vm4, %v728_v39, 0.0 }
 0x3d7   :  { %1400 = vpow2.f32 %v263_v46  ;;  %v34_v46 = vld [vmem:[%s1821_s6 + $0x10] sm:$0xff] }
 0x3d8   :  { %1402 = vpow2.f32 %v265_v47  ;;  %v35_v47 = vld [vmem:[%s1821_s6 + $0x18] sm:$0xff] }
 0x3e4   :  { %v1401_v48 = vpop.eup %1400 }
 0x3e5   :  { %v267_v49 = vsel %vm53_vm0, %v1401_v48, 0.0  ;;  %v1403_v50 = vpop.eup %1402 }
 0x3e6   :  { %268 = vadd.xlane.f32.xlu1 %v267_v49  ;;  %v270_v54 = vsel %vm53_vm0, %v1403_v50, 0.0  ;;  %v32_v49 = vld [vmem:[%s1821_s6] sm:$0xff] }
 0x3ea   :  { %271 = vadd.xlane.f32.xlu1 %v270_v54 }
 0x3fb   :  { %1360 = vrot.lane.b32.xlu1 %v1359_v40, %s1451_s19 }
 0x41f   :  { %643 = vadd.xlane.f32.xlu1 %v642_v57 }
 0x423   :  { %646 = vadd.xlane.f32.xlu1 %v645_v59 }
 0x46f   :  { %v269_v60 = vpop.xlane.xlu1 %268 }
 0x470   :  { %1404 = vrcp.f32 %v269_v60 }
 0x473   :  { %v272_v61 = vpop.xlane.xlu1 %271 }
 0x474   :  { %1406 = vrcp.f32 %v272_v61 }
 0x477   :  { %v1361_v31 = vpop.permute.xlu1 %1360 }
 0x478   :  { %v1363_v36 = vunpack.i.h.bf16 %v1361_v31  ;;  %v1362_v40 = vunpack.i.l.bf16 %v1361_v31 }
 0x47a   :  { %v319_v62 = vsel %vm140_vm4, %v1528_v18, %v1362_v40  ;;  %v320_v63 = vsel %vm140_vm4, %v1536_v22, %v1363_v36  ;;  %v1211_v18 = vld [vmem:[%s1816_s0 + $0x10] sm:$0xff]  ;;  %v1667_v36 = vld [vmem:[%s1817_s2 + $0x18] sm:$0xff] }
 0x47b   :  { %v321_v1 = vpack.c.bf16 %v320_v63, %v319_v62 }
 0x47d   :  { %v1405_v2 = vpop.eup %1404  ;;  %1268 = vmatpush3.bf16.msra.mxu1 %v321_v1 }
 0x47e   :  { %v275_v3 = vmul.f32 %v1405_v2, %v1401_v48  ;;  %1279 = vmatprep.subr.bf16.mxu1 %v1449_v14  ;;  %v1649_v48 = vpack.c.bf16 %v35_v47, %v34_v46 }
 0x480   :  { %278 = vxpose.xlu0.b32.start [1/2] (short) (narrow) %v275_v3, 16 }
 0x481   :  { %v1407_v4 = vpop.eup %1406 }
 0x482   :  { %v276_v6 = vmul.f32 %v1407_v4, %v1403_v50  ;;  %v33_v50 = vld [vmem:[%s1821_s6 + $0x8] sm:$0xff] }
 0x483   :  { %v1659_v54 = vpack.c.bf16 %v33_v50, %v32_v49 }
 0x484   :  { %v277_v7 = vpack.c.bf16 %v276_v6, %v275_v3  ;;  %279 = vxpose.xlu0.b32.end [2/2] (short) (narrow) %v276_v6, 16 }
 0x486   :  { %1270 = vmatmul.mubr.msk.bf16.vlgmr.msra.gmra.mxu1 %vm53_vm0, %v277_v7 }
 0x487   :  { %1281 = vmatprep.mubr.msk.bf16.mxu1 %vm1450_vm3, %v1449_v14 }
 0x4a8   :  { %v644_v22 = vpop.xlane.xlu1 %643 }
 0x4a9   :  { %v648_v8 = vadd.f32 %v1211_v18, %v644_v22  ;;  %v41_v22 = vld [vmem:[%s1822_s7 + $0x18] sm:$0xff] }
 0x4ab   :  { %1408 = vrsqrt.f32 %v648_v8  ;;  %vm650_vm5 = vcmp.gt.f32.partialorder %v648_v8, 0.0 }
 0x4ac   :  { %v647_v10 = vpop.xlane.xlu1 %646 }
 0x4ad   :  { %v649_v11 = vadd.f32 %v1212_v9, %v647_v10  ;;  %1364 = vset.pattern.permute.xlu0 %v1448_v5  ;;  %v39_v10 = vld [vmem:[%s1822_s7 + $0x8] sm:$0xff] }
 0x4af   :  { %1410 = vrsqrt.f32 %v649_v11  ;;  %vm651_vm6 = vcmp.gt.f32.partialorder %v649_v11, 0.0 }
 0x4b8   :  { %v1409_v12 = vpop.eup %1408 }
 0x4b9   :  { %v654_v13 = vsel %vm650_vm5, %v1409_v12, 0.0 }
 0x4ba   :  { %658 = vperm.xlu0 %1364, %v654_v13  }
 0x4bc   :  { %v1411_v15 = vpop.eup %1410 }
 0x4bd   :  { %v655_v16 = vsel %vm651_vm6, %v1411_v15, 0.0 }
 0x4be   :  { %663 = vperm.xlu1 %1358, %v655_v16  }
 0x4d9   :  { %731 = vadd.xlane.f32.xlu0 %v730_v41  ;;  %v729_v41 = vmul.f32 %v1667_v36, %v1523_v17 }
 0x4ef   :  { %792 = vperm.xlu0 %1364, %v1211_v18   ;;  %v40_v18 = vld [vmem:[%s1822_s7 + $0x10] sm:$0xff] }
 0x4f0   :  { %v1688_v8 = vpack.c.bf16 %v41_v22, %v40_v18 }
 0x4f3   :  { %797 = vperm.xlu0 %1364, %v1212_v9   ;;  %v38_v9 = vld [vmem:[%s1822_s7] sm:$0xff] }
 0x4f4   :  { %v1698_v11 = vpack.c.bf16 %v39_v10, %v38_v9 }
 0x4fc   :  { %v294_v21 = vpop.trf.xlu0 }
 0x500   :  { %v295_v29 = vpop.trf.xlu0 }
 0x501   :  { %v310_v5 = vpack.c.bf16 %v295_v29, %v294_v21 }
 0x535   :  { %v659_v31 = vpop.permute.xlu0 %658 }
 0x536   :  { %v666_v62 = vmul.f32 %v1634_v38, %v659_v31 }
 0x539   :  { %v664_v61 = vpop.permute.xlu1 %663 }
 0x53a   :  { %v667_v63 = vmul.f32 %v1667_v36, %v664_v61 }
 0x546   :  { %v1619_v19 = vpop.f32.mrf.mxu1 }
 0x548   :  { %v1271_v23 = vpop.f32.mrf.mxu1 }
 0x54a   :  { %v362_v24 = vpop.f32.mrf.mxu1 }
 0x54b   :  { %v366_v26 = vpack.c.bf16 %v362_v24, %v1619_v19 }
 0x54c   :  { %v1272_v28 = vpop.f32.mrf.mxu1 }
 0x54d   :  { %1274 = vmatpush3.bf16.msra.mxu0 %v366_v26 }
 0x54e   :  { %1285 = vmatprep.subr.bf16.mxu0 %v1449_v14 }
 0x550   :  { %1276 = vmatmul.mubr.msk.bf16.vlgmr.msra.gmra.mxu0 %vm53_vm0, %v310_v5 }
 0x551   :  { %1287 = vmatprep.mubr.msk.bf16.mxu0 %vm1450_vm3, %v1449_v14 }
 0x610   :  { %v404_v32 = vpop.f32.mrf.mxu0 }
 0x612   :  { %v1277_v33 = vpop.f32.mrf.mxu0 }
 0x614   :  { %v407_v34 = vpop.f32.mrf.mxu0 }
 0x615   :  { %v411_v35 = vpack.c.bf16 %v407_v34, %v404_v32 }
 0x616   :  { %v1278_v37 = vpop.f32.mrf.mxu0 }
 0x617   :  { %1280 = vmatpush3.bf16.msra.mxu1 %v411_v35 }
 0x618   :  { %1291 = vmatprep.subr.bf16.mxu1 %v1449_v14 }
 0x61a   :  { %1282 = vmatmul.mubr.msk.bf16.vlgmr.msra.gmra.mxu1 %vm53_vm0, %v1501_v0 }
 0x61b   :  { %1295 = vmatprep.mubr.msk.bf16.mxu1 %vm1450_vm3, %v1449_v14  ;;  %1292 = vmatpush3.bf16.msra.mxu1 %v1649_v48 }
 0x61c   :  { %1293 = vmatprep.subr.bf16.mxu1 %v1449_v14 }
 0x61f   :  { %1294 = vmatpush3.bf16.msra.mxu1 %v1659_v54 }
 0x620   :  { %1307 = vmatprep.subr.bf16.mxu1 %v1449_v14 }
 0x6da   :  { %v446_v42 = vpop.f32.mrf.mxu1 }
 0x6dc   :  { %v1283_v43 = vpop.f32.mrf.mxu1 }
 0x6de   :  { %v449_v44 = vpop.f32.mrf.mxu1 }
 0x6df   :  { %v453_v0 = vpack.c.bf16 %v449_v44, %v446_v42  ;;  %v733_v44 = vsel %vm140_vm4, %v729_v41, 0.0 }
 0x6e0   :  { %v1284_v45 = vpop.f32.mrf.mxu1 }
 0x6e1   :  { %1286 = vmatpush3.bf16.msra.mxu0 %v453_v0  ;;  %v732_v0 = vpop.xlane.xlu0 %731 }
 0x6e2   :  { %1299 = vmatprep.subr.bf16.mxu0 %v1449_v14 }
 0x6e4   :  { %1288 = vmatmul.mubr.msk.bf16.vlgmr.msra.gmra.mxu0 %vm53_vm0, %v277_v7  ;;  %v668_v7 = vpack.c.bf16 %v667_v63, %v666_v62 }
 0x6e5   :  { %1303 = vmatprep.mubr.msk.bf16.mxu0 %vm1450_vm3, %v1449_v14  ;;  %1300 = vmatpush3.bf16.msra.mxu0 %v1688_v8  ;;  %v793_v18 = vpop.permute.xlu0 %792 }
 0x6e6   :  { %1301 = vmatprep.subr.bf16.mxu0 %v1449_v14 }
 0x6e9   :  { %1302 = vmatpush3.bf16.msra.mxu0 %v1698_v11  ;;  %v798_v10 = vpop.permute.xlu0 %797 }
 0x6ea   :  { %1313 = vmatprep.subr.bf16.mxu0 %v1449_v14 }
 0x7a4   :  { %v488_v56 = vpop.f32.mrf.mxu0 }
 0x7a6   :  { %v1289_v57 = vpop.f32.mrf.mxu0 }
 0x7a8   :  { %v491_v58 = vpop.f32.mrf.mxu0 }
 0x7a9   :  { %v1365_v59 = vpack.i.bf16 %v491_v58, %v488_v56 }
 0x7aa   :  { %v1290_v60 = vpop.f32.mrf.mxu0 }
 0x7ab   :  { %1366 = vrot.lane.b32.xlu1 %v1365_v59, %s1452_s12 }
 0x81d   :  { %v1367_v40 = vpop.permute.xlu1 %1366 }
 0x81e   :  { %v1369_v1 = vunpack.i.h.bf16 %v1367_v40  ;;  %v1368_v2 = vunpack.i.l.bf16 %v1367_v40 }
 0x820   :  { %v504_v3 = vsel %vm53_vm0, %v362_v24, %v1369_v1  ;;  %v503_v4 = vsel %vm53_vm0, %v1619_v19, %v1368_v2 }
 0x821   :  { %v505_v6 = vpack.c.bf16 %v504_v3, %v503_v4 }
 0x823   :  { %1296 = vmatmul.mubr.msk.bf16.vlgmr.msra.gmra.mxu1 %vm506_vm7, %v505_v6 }
 0x824   :  { %1308 = vmatpush3.bf16.msra.mxu1 %v668_v7  ;;  %1309 = vmatprep.mubr.msk.bf16.mxu1 %vm1450_vm3, %v1449_v14 }
 0x825   :  { %1319 = vmatprep.subr.bf16.mxu1 %v1449_v14 }
 0x82b   :  { %1310 = vmatmul.mubr.msk.bf16.vlgmr.msra.gmra.mxu1 %vm53_vm0, %v1598_v55 }
 0x82c   :  { %1321 = vmatprep.mubr.msk.bf16.mxu1 %vm1450_vm3, %v1449_v14 }
 0x8e3   :  { %v544_v12 = vpop.f32.mrf.mxu1 }
 0x8e4   :  { %v551_v16 = vmax.f32 %v544_v12, 0.0 }
 0x8e5   :  { %v1297_v13 = vpop.f32.mrf.mxu1 }
 0x8e7   :  { %v547_v15 = vpop.f32.mrf.mxu1 }
 0x8e8   :  { %v552_v19 = vmax.f32 %v547_v15, 0.0 }
 0x8e9   :  { %v1298_v21 = vpop.f32.mrf.mxu1 }
 0x8ea   :  { %v553_v23 = vpack.c.bf16 %v552_v19, %v551_v16 }
 0x8eb   :  { %v711_v24 = vpop.f32.mrf.mxu1 }
 0x8ec   :  { %v712_v26 = vadd.f32 %v711_v24, %v666_v62  ;;  %1304 = vmatmul.mubr.msk.bf16.vlgmr.msra.gmra.mxu0 %vm506_vm7, %v553_v23  ;;  %v1213_v23 = vld [vmem:[%s1820_s1 + $0x1] sm:$0x1] }
 0x8ed   :  { %v1311_v28 = vpop.f32.mrf.mxu1  ;;  %1315 = vmatprep.mubr.msk.bf16.mxu0 %vm1450_vm3, %v1449_v14 }
 0x8ee   :  { %v1705_v29 = vmul.f32 %v712_v26, %v659_v31  ;;  %v1220_v28 = vadd.f32 -1.0, %v1213_v23 }
 0x8ef   :  { %v714_v5 = vpop.f32.mrf.mxu1 }
 0x8f0   :  { %v715_v32 = vadd.f32 %v714_v5, %v667_v63  ;;  %v720_v33 = vmul.f32 %v1548_v30, %v1705_v29 }
 0x8f1   :  { %v1312_v34 = vpop.f32.mrf.mxu1 }
 0x8f2   :  { %v1709_v35 = vmul.f32 %v715_v32, %v664_v61  ;;  %v722_v37 = vsel %vm140_vm4, %v720_v33, 0.0  ;;  %v812_v33 = vmul.f32 1e+09, %v1220_v28 }
 0x8f3   :  { %723 = vadd.xlane.f32.xlu1 %v722_v37 }
 0x8f4   :  { %v721_v39 = vmul.f32 %v1548_v30, %v1709_v35  ;;  %v1370_v42 = vpack.i.bf16 %v1709_v35, %v1705_v29 }
 0x8f6   :  { %v725_v43 = vsel %vm140_vm4, %v721_v39, 0.0  ;;  %v821_v39 = vrot.slane %v812_v33, %v1569_v53 }
 0x8f7   :  { %726 = vadd.xlane.f32.xlu1 %v725_v43 }
 0x8fb   :  { %734 = vadd.xlane.f32.xlu1 %v733_v44 }
 0x97c   :  { %v724_v45 = vpop.xlane.xlu1 %723 }
 0x97d   :  { %v736_v46 = vadd.f32 %v732_v0, %v724_v45 }
 0x97f   :  { %1412 = vtanh.f32 %v736_v46 }
 0x980   :  { %v727_v47 = vpop.xlane.xlu1 %726 }
 0x984   :  { %v735_v49 = vpop.xlane.xlu1 %734 }
 0x985   :  { %v737_v50 = vadd.f32 %v735_v49, %v727_v47 }
 0x987   :  { %1414 = vtanh.f32 %v737_v50 }
 0x98c   :  { %v1413_v30 = vpop.eup %1412 }
 0x98d   :  { %740 = vxpose.xlu1.b32.start [1/2] (short) (narrow) %v1413_v30, 8 }
 0x994   :  { %v1415_v17 = vpop.eup %1414 }
 0x995   :  { %741 = vxpose.xlu1.b32.end [2/2] (short) (narrow) %v1415_v17, 8 }
 0x9ac   :  { %v1720_v56 = vpop.f32.mrf.mxu0 }
 0x9ae   :  { %v1305_v57 = vpop.f32.mrf.mxu0 }
 0x9b0   :  { %v1722_v58 = vpop.f32.mrf.mxu0 }
 0x9b2   :  { %v1306_v59 = vpop.f32.mrf.mxu0 }
 0xa0d   :  { %v756_v60 = vpop.trf.xlu1 }
 0xa0e   :  { %v775_v61 = vrot.slane %v756_v60, %v1569_v53 }
 0xa10   :  { %v776_v31 = vsub.f32 %v775_v61, %v1413_v30  ;;  %v777_v40 = vsub.f32 %v775_v61, %v1415_v17 }
 0xa12   :  { %v778_v62 = vmul.f32 -10.0, %v776_v31  ;;  %v779_v63 = vmul.f32 -10.0, %v777_v40 }
 0xa14   :  { %v780_v1 = vmul.f32 1.442695, %v778_v62  ;;  %v782_v2 = vmul.f32 1.442695, %v779_v63 }
 0xa16   :  { %1416 = vpow2.f32 %v780_v1 }
 0xa17   :  { %1418 = vpow2.f32 %v782_v2 }
 0xa23   :  { %v1417_v3 = vpop.eup %1416 }
 0xa24   :  { %v1419_v4 = vpop.eup %1418  ;;  %v784_v6 = vadd.f32 1.0, %v1417_v3 }
 0xa25   :  { %v785_v7 = vadd.f32 1.0, %v1419_v4 }
 0xa26   :  { %1420 = vrcp.f32 %v784_v6 }
 0xa27   :  { %1422 = vrcp.f32 %v785_v7 }
 0xa33   :  { %v1421_v22 = vpop.eup %1420 }
 0xa34   :  { %v1423_v9 = vpop.eup %1422  ;;  %v800_v12 = vmul.f32 %v1421_v22, %v793_v18 }
 0xa35   :  { %v801_v13 = vmul.f32 %v1423_v9, %v798_v10 }
 0xa36   :  { %v802_v15 = vsel %vm53_vm0, %v800_v12, 0.0 }
 0xa37   :  { %v803_v16 = vsel %vm53_vm0, %v801_v13, 0.0 }
 0xa38   :  { %v804_v19 = vadd.f32 %v803_v16, %v802_v15 }
 0xa3a   :  { %v805_v21 = vrot.slane %v804_v19, 4 }
 0xa3c   :  { %v806_v24 = vadd.f32 %v805_v21, %v804_v19 }
 0xa3e   :  { %v807_v26 = vrot.slane %v806_v24, 2 }
 0xa40   :  { %v808_v5 = vadd.f32 %v807_v26, %v806_v24 }
 0xa42   :  { %v809_v32 = vrot.slane %v808_v5, 1 }
 0xa44   :  { %v810_v34 = vadd.f32 %v809_v32, %v808_v5 }
 0xa46   :  { %v814_v37 = vsub.f32 %v810_v34, %v240_v25  ;;  %v813_v41 = vsub.f32 %v810_v34, %v239_v27 }
 0xa48   :  { %v816_v43 = vmul.f32 %v814_v37, %v814_v37  ;;  %v815_v44 = vmul.f32 %v813_v41, %v813_v41 }
 0xa4a   :  { %v824_v0 = vsub.f32 %v821_v39, %v816_v43  ;;  %v823_v45 = vsub.f32 %v821_v39, %v815_v44 }
 0xa4c   :  { %v828_v46 = vsel %vm53_vm0, %v824_v0, -inf  ;;  %v825_v47 = vsel %vm53_vm0, %v823_v45, -inf }
 0xa4d   :  { %829 = vmax.xlane.f32.xlu1 %v828_v46  ;;  %826 = vmax.xlane.f32.xlu0 %v825_v47 }
 0xad6   :  { %v830_v49 = vpop.xlane.xlu1 %829  ;;  %v827_v50 = vpop.xlane.xlu0 %826 }
 0xad7   :  { %v832_v30 = vsub.f32 %v824_v0, %v830_v49  ;;  %v831_v20 = vsub.f32 %v823_v45, %v827_v50 }
 0xad9   :  { %v833_v25 = vmul.f32 1.442695, %v831_v20  ;;  %v835_v17 = vmul.f32 1.442695, %v832_v30 }
 0xadb   :  { %1424 = vpow2.f32 %v833_v25 }
 0xadc   :  { %1426 = vpow2.f32 %v835_v17 }
 0xae8   :  { %v1425_v52 = vpop.eup %1424 }
 0xae9   :  { %v837_v53 = vsel %vm53_vm0, %v1425_v52, 0.0  ;;  %v1427_v27 = vpop.eup %1426 }
 0xaea   :  { %838 = vadd.xlane.f32.xlu0 %v837_v53  ;;  %v840_v57 = vsel %vm53_vm0, %v1427_v27, 0.0 }
 0xaee   :  { %841 = vadd.xlane.f32.xlu0 %v840_v57 }
 0xb04   :  { %1371 = vrot.lane.b32.xlu0 %v1370_v42, %s1451_s19 }
 0xb73   :  { %v839_v59 = vpop.xlane.xlu0 %838 }
 0xb74   :  { %1428 = vrcp.f32 %v839_v59 }
 0xb77   :  { %v842_v60 = vpop.xlane.xlu0 %841 }
 0xb78   :  { %1430 = vrcp.f32 %v842_v60 }
 0xb7b   :  { %v1372_v61 = vpop.permute.xlu0 %1371 }
 0xb7c   :  { %v1374_v31 = vunpack.i.h.bf16 %v1372_v61  ;;  %v1373_v40 = vunpack.i.l.bf16 %v1372_v61 }
 0xb7e   :  { %v890_v62 = vsel %vm140_vm4, %v1667_v36, %v1374_v31  ;;  %v889_v63 = vsel %vm140_vm4, %v1634_v38, %v1373_v40  ;;  %v1752_v36 = vand.u32 127, %v197_v51 }
 0xb7f   :  { %v891_v1 = vpack.c.bf16 %v890_v62, %v889_v63 }
 0xb80   :  { %vm600_vm8 = vcmp.lt.s32.totalorder %v1752_v36, 4 }
 0xb81   :  { %v1429_v2 = vpop.eup %1428  ;;  %1314 = vmatpush3.bf16.msra.mxu0 %v891_v1  ;;  %v1758_v38 = vsel %vm600_vm8, %v1722_v58, -1e+30  ;;  %v601_v33 = vsel %vm600_vm8, %v1720_v56, -1e+30 }
 0xb82   :  { %v845_v3 = vmul.f32 %v1429_v2, %v1425_v52  ;;  %1325 = vmatprep.subr.bf16.mxu0 %v1449_v14 }
 0xb84   :  { %848 = vxpose.xlu0.b32.start [1/2] (short) (narrow) %v845_v3, 16 }
 0xb85   :  { %v1431_v29 = vpop.eup %1430 }
 0xb86   :  { %v846_v35 = vmul.f32 %v1431_v29, %v1427_v27 }
 0xb88   :  { %v847_v42 = vpack.c.bf16 %v846_v35, %v845_v3  ;;  %849 = vxpose.xlu0.b32.end [2/2] (short) (narrow) %v846_v35, 16 }
 0xb8a   :  { %1316 = vmatmul.mubr.msk.bf16.vlgmr.msra.gmra.mxu0 %vm53_vm0, %v847_v42 }
 0xb8b   :  { %1327 = vmatprep.mubr.msk.bf16.mxu0 %vm1450_vm3, %v1449_v14 }
 0xbb5   :  { %605 = vmax.xlane.f32.xlu0 %v1758_v38 }
 0xc00   :  { %v864_v6 = vpop.trf.xlu0 }
 0xc04   :  { %v865_v10 = vpop.trf.xlu0 }
 0xc05   :  { %v880_v12 = vpack.c.bf16 %v865_v10, %v864_v6 }
 0xc3e   :  { %v606_v30 = vpop.xlane.xlu0 %605 }
 0xc3f   :  { %v608_v20 = vsub.f32 %v1758_v38, %v606_v30 }
 0xc41   :  { %v611_v17 = vmul.f32 1.442695, %v608_v20 }
 0xc4a   :  { %v929_v4 = vpop.f32.mrf.mxu0 }
 0xc4c   :  { %v1317_v7 = vpop.f32.mrf.mxu0 }
 0xc4e   :  { %v932_v18 = vpop.f32.mrf.mxu0 }
 0xc4f   :  { %v936_v22 = vpack.c.bf16 %v932_v18, %v929_v4 }
 0xc50   :  { %v1318_v9 = vpop.f32.mrf.mxu0 }
 0xc51   :  { %1320 = vmatpush3.bf16.msra.mxu1 %v936_v22 }
 0xc52   :  { %1331 = vmatprep.subr.bf16.mxu1 %v1449_v14 }
 0xc54   :  { %1322 = vmatmul.mubr.msk.bf16.vlgmr.msra.gmra.mxu1 %vm53_vm0, %v880_v12 }
 0xc55   :  { %1333 = vmatprep.mubr.msk.bf16.mxu1 %vm1450_vm3, %v1449_v14 }
 0xd14   :  { %v974_v51 = vpop.f32.mrf.mxu1 }
 0xd16   :  { %v1323_v13 = vpop.f32.mrf.mxu1 }
 0xd17   :  { %v620_v13 = vsub.f32 %v1722_v58, %v606_v30 }
 0xd18   :  { %v977_v15 = vpop.f32.mrf.mxu1 }
 0xd19   :  { %v981_v16 = vpack.c.bf16 %v977_v15, %v974_v51 }
 0xd1a   :  { %v1324_v19 = vpop.f32.mrf.mxu1 }
 0xd1b   :  { %1326 = vmatpush3.bf16.msra.mxu0 %v981_v16 }
 0xd1c   :  { %1337 = vmatprep.subr.bf16.mxu0 %v1449_v14 }
 0xd1e   :  { %1328 = vmatmul.mubr.msk.bf16.vlgmr.msra.gmra.mxu0 %vm53_vm0, %v1598_v55 }
 0xd1f   :  { %1338 = vmatpush3.bf16.msra.mxu0 %v1649_v48  ;;  %1341 = vmatprep.mubr.msk.bf16.mxu0 %vm1450_vm3, %v1449_v14 }
 0xd20   :  { %1339 = vmatprep.subr.bf16.mxu0 %v1449_v14 }
 0xd23   :  { %1340 = vmatpush3.bf16.msra.mxu0 %v1659_v54 }
 0xdde   :  { %v1016_v21 = vpop.f32.mrf.mxu0 }
 0xde0   :  { %v1329_v23 = vpop.f32.mrf.mxu0 }
 0xde2   :  { %v1019_v24 = vpop.f32.mrf.mxu0 }
 0xde3   :  { %v1023_v26 = vpack.c.bf16 %v1019_v24, %v1016_v21 }
 0xde4   :  { %v1330_v28 = vpop.f32.mrf.mxu0 }
 0xde5   :  { %1332 = vmatpush3.bf16.msra.mxu1 %v1023_v26 }
 0xde6   :  { %1345 = vmatprep.subr.bf16.mxu1 %v1449_v14 }
 0xde8   :  { %1334 = vmatmul.mubr.msk.bf16.vlgmr.msra.gmra.mxu1 %vm53_vm0, %v847_v42 }
 0xde9   :  { %1346 = vmatpush3.bf16.msra.mxu1 %v1688_v8  ;;  %1349 = vmatprep.mubr.msk.bf16.mxu1 %vm1450_vm3, %v1449_v14 }
 0xdea   :  { %1347 = vmatprep.subr.bf16.mxu1 %v1449_v14 }
 0xded   :  { %1348 = vmatpush3.bf16.msra.mxu1 %v1698_v11 }
 0xea8   :  { %v1058_v55 = vpop.f32.mrf.mxu1 }
 0xeaa   :  { %v1335_v48 = vpop.f32.mrf.mxu1 }
 0xeac   :  { %v1061_v54 = vpop.f32.mrf.mxu1 }
 0xead   :  { %v1375_v5 = vpack.i.bf16 %v1061_v54, %v1058_v55 }
 0xeae   :  { %v1336_v32 = vpop.f32.mrf.mxu1 }
 0xeaf   :  { %1376 = vrot.lane.b32.xlu1 %v1375_v5, %s1452_s12 }
 0xed3   :  { %603 = vmax.xlane.f32.xlu1 %v601_v33 }
 0xf21   :  { %v1377_v8 = vpop.permute.xlu1 %1376 }
 0xf22   :  { %v1379_v34 = vunpack.i.h.bf16 %v1377_v8  ;;  %v1378_v37 = vunpack.i.l.bf16 %v1377_v8 }
 0xf24   :  { %v1074_v39 = vsel %vm53_vm0, %v932_v18, %v1379_v34  ;;  %v1073_v14 = vsel %vm53_vm0, %v929_v4, %v1378_v37 }
 0xf25   :  { %v1075_v11 = vpack.c.bf16 %v1074_v39, %v1073_v14 }
 0xf27   :  { %1342 = vmatmul.mubr.msk.bf16.vlgmr.msra.gmra.mxu0 %vm506_vm7, %v1075_v11 }
 0xf5c   :  { %v604_v49 = vpop.xlane.xlu1 %603 }
 0xf5d   :  { %v607_v50 = vsub.f32 %v601_v33, %v604_v49  ;;  %v619_v9 = vsub.f32 %v1720_v56, %v604_v49 }
 0xf5f   :  { %v609_v25 = vmul.f32 1.442695, %v607_v50 }
 0xf61   :  { %1432 = vpow2.f32 %v609_v25 }
 0xf62   :  { %1434 = vpow2.f32 %v611_v17 }
 0xf6e   :  { %v1433_v60 = vpop.eup %1432 }
 0xf6f   :  { %v613_v31 = vsel %vm600_vm8, %v1433_v60, 0.0  ;;  %v1435_v40 = vpop.eup %1434 }
 0xf70   :  { %v614_v62 = vsel %vm600_vm8, %v1435_v40, 0.0 }
 0xfe7   :  { %v1113_v41 = vpop.f32.mrf.mxu0 }
 0xfe8   :  { %v1120_v0 = vmax.f32 %v1113_v41, 0.0 }
 0xfe9   :  { %v1343_v43 = vpop.f32.mrf.mxu0 }
 0xfeb   :  { %v1116_v44 = vpop.f32.mrf.mxu0 }
 0xfec   :  { %v1121_v45 = vmax.f32 %v1116_v44, 0.0 }
 0xfed   :  { %v1344_v46 = vpop.f32.mrf.mxu0 }
 0xfee   :  { %v1122_v47 = vpack.c.bf16 %v1121_v45, %v1120_v0 }
 0xff0   :  { %1350 = vmatmul.mubr.msk.bf16.vlgmr.msra.gmra.mxu1 %vm506_vm7, %v1122_v47 }
0x10b0   :  { %v1160_v52 = vpop.f32.mrf.mxu1 }
0x10b1   :  { %v1167_v53 = vsel %vm600_vm8, %v1160_v52, -1e+30 }
0x10b2   :  { %1169 = vmax.xlane.f32.xlu1 %v1167_v53  ;;  %v1351_v27 = vpop.f32.mrf.mxu1 }
0x10b4   :  { %v1163_v57 = vpop.f32.mrf.mxu1 }
0x10b5   :  { %v1168_v59 = vsel %vm600_vm8, %v1163_v57, -1e+30 }
0x10b6   :  { %1171 = vmax.xlane.f32.xlu1 %v1168_v59  ;;  %v1352_v61 = vpop.f32.mrf.mxu1 }
0x10ba   :  { %615 = vadd.xlane.f32.xlu1 %v613_v31 }
0x10be   :  { %617 = vadd.xlane.f32.xlu1 %v614_v62 }
0x113b   :  { %v1170_v63 = vpop.xlane.xlu1 %1169 }
0x113c   :  { %v1173_v1 = vsub.f32 %v1167_v53, %v1170_v63  ;;  %v1185_v21 = vsub.f32 %v1160_v52, %v1170_v63 }
0x113e   :  { %v1175_v2 = vmul.f32 1.442695, %v1173_v1 }
0x113f   :  { %v1172_v3 = vpop.xlane.xlu1 %1171 }
0x1140   :  { %1436 = vpow2.f32 %v1175_v2  ;;  %v1174_v29 = vsub.f32 %v1168_v59, %v1172_v3  ;;  %v1186_v58 = vsub.f32 %v1163_v57, %v1172_v3 }
0x1142   :  { %v1177_v35 = vmul.f32 1.442695, %v1174_v29 }
0x1143   :  { %v616_v42 = vpop.xlane.xlu1 %615 }
0x1144   :  { %1438 = vpow2.f32 %v1177_v35 }
0x1145   :  { %1440 = vlog2.f32 %v616_v42 }
0x1147   :  { %v618_v38 = vpop.xlane.xlu1 %617 }
0x1148   :  { %1442 = vlog2.f32 %v618_v38 }
0x114d   :  { %v1437_v4 = vpop.eup %1436 }
0x114e   :  { %v1179_v6 = vsel %vm600_vm8, %v1437_v4, 0.0 }
0x114f   :  { %1181 = vadd.xlane.f32.xlu1 %v1179_v6 }
0x1151   :  { %v1439_v7 = vpop.eup %1438 }
0x1152   :  { %v1441_v18 = vpop.eup %1440  ;;  %v1180_v22 = vsel %vm600_vm8, %v1439_v7, 0.0 }
0x1153   :  { %v622_v10 = vmul.f32 0.6931472, %v1441_v18  ;;  %1183 = vadd.xlane.f32.xlu1 %v1180_v22 }
0x1155   :  { %v1443_v12 = vpop.eup %1442  ;;  %v625_v51 = vsub.f32 %v619_v9, %v622_v10 }
0x1156   :  { %v624_v15 = vmul.f32 0.6931472, %v1443_v12 }
0x1157   :  { %627 = vst [vmem:[%s1823_s8] sm:$0xff] %v625_v51 }
0x1158   :  { %v626_v16 = vsub.f32 %v620_v13, %v624_v15 }
0x115a   :  { %628 = vst [vmem:[%s1823_s8 + $0x8] sm:$0xff] %v626_v16 }
0x11d8   :  { %v1182_v36 = vpop.xlane.xlu1 %1181 }
0x11d9   :  { %1444 = vlog2.f32 %v1182_v36 }
0x11dc   :  { %v1184_v19 = vpop.xlane.xlu1 %1183 }
0x11dd   :  { %1446 = vlog2.f32 %v1184_v19 }
0x11e6   :  { %v1445_v56 = vpop.eup %1444 }
0x11e7   :  { %v1188_v23 = vmul.f32 0.6931472, %v1445_v56 }
0x11e9   :  { %v1191_v24 = vsub.f32 %v1185_v21, %v1188_v23 }
0x11ea   :  { %v1447_v26 = vpop.eup %1446 }
0x11eb   :  { %1227 = vst [vmem:[%s1823_s8 + $0x10] sm:$0xff] %v1191_v24  ;;  %v1190_v28 = vmul.f32 0.6931472, %v1447_v26 }
0x11ed   :  { %v1192_v55 = vsub.f32 %v1186_v58, %v1190_v28 }
0x11ef   :  { %1228 = vst [vmem:[%s1823_s8 + $0x18] sm:$0xff] %v1192_v55 }

</bundles_post_ra>
